<compile_context>
chip_gen: v7x
topology: tpu7x:2x2x1
jax: 0.10.0
libtpu: 0.0.40
codegen_flags: <defaults>
</compile_context>

<pallas_src>
from functools import partial

import jax
import jax.numpy as jnp
import numpy as np
from jax.experimental import pallas as pl
from jax.experimental.pallas import tpu as pltpu

CONF_THRESHOLD = 0.1
BN_EPS = 1e-5


def _round_up(n, m):
    return ((n + m - 1) // m) * m


# ---------------------------------------------------------------------------
# Fused kernel, one grid step per temporal chunk of Tc frames (all B samples):
#   mask -> Linear(2*Kp -> Hp, bf16 x bf16 -> f32) -> ReLU -> per-sample sum
#   accumulated into acc_ref; on the last chunk: /length, BatchNorm1d
#   (training mode), classifier Linear, store.
# ---------------------------------------------------------------------------
def _fused_kernel(pos_ref,        # (B, Tc, 2*Kp)  bf16, x‖y, zero-padded lanes
                  conf_ref,       # (B, Tc, Kp)    bf16 confidences (pads = 0)
                  len_ref,        # (B, 1)         f32 sequence lengths
                  w1_ref,         # (2*Kp, Hp)     bf16 [Wx; Wy], zero-padded
                  b1_ref,         # (1, Hp)        f32
                  gamma_ref,      # (1, Hp)        f32
                  beta_ref,       # (1, Hp)        f32
                  w2_ref,         # (Hp, C)        f32
                  b2_ref,         # (1, C)         f32
                  out_ref,        # (B, C)         f32
                  acc_ref,        # (B, Hp)        f32 scratch (pooled sums)
                  *, t_total, t_pad):
    B, Tc, two_kp = pos_ref.shape
    Kp = two_kp // 2
    Hp = b1_ref.shape[1]
    t = pl.program_id(0)

    @pl.when(t == 0)
    def _init():
        acc_ref[...] = jnp.zeros_like(acc_ref)

    # Confidence gating (single conf stream, mask applied to both halves).
    pos = pos_ref[...]                                        # bf16
    maskf = (conf_ref[...] > CONF_THRESHOLD).astype(pos.dtype)  # bf16 0/1
    rows = jnp.concatenate([pos[..., :Kp] * maskf, pos[..., Kp:] * maskf],
                           axis=-1).reshape(B * Tc, two_kp)   # (B*Tc, 2Kp)

    # First Linear + ReLU: bf16 operands, f32 accumulation on the MXU.
    z = jnp.dot(rows, w1_ref[...],
                preferred_element_type=jnp.float32) + b1_ref[...]
    h = jnp.maximum(z, 0.0).reshape(B, Tc, Hp)                # f32

    # Zero padded frames (only traced when T was padded up to a chunk multiple).
    if t_pad != t_total:
        frame = t * Tc + jax.lax.broadcasted_iota(jnp.int32, (1, Tc, 1), 1)
        h = jnp.where(frame < t_total, h, 0.0)

    # Per-sample temporal sum, accumulated across chunks.
    acc_ref[...] += jnp.sum(h, axis=1)                        # (B, Hp)

    @pl.when(t == pl.num_programs(0) - 1)
    def _finalize():
        inv_len = pl.reciprocal(len_ref[...], approx=False)   # (B, 1)
        pooled = acc_ref[...] * inv_len                       # (B, Hp)

        # BatchNorm1d, training mode: batch statistics, biased variance.
        mean = jnp.mean(pooled, axis=0, keepdims=True)
        var = jnp.mean((pooled - mean) ** 2, axis=0, keepdims=True)
        inv_std = jax.lax.rsqrt(var + BN_EPS)                 # EUP rsqrt
        y = (pooled - mean) * inv_std * gamma_ref[...] + beta_ref[...]

        # Classifier Linear(Hp -> C).
        out_ref[...] = (jnp.dot(y, w2_ref[...],
                                preferred_element_type=jnp.float32)
                        + b2_ref[...])


# ---------------------------------------------------------------------------
# One-time parameter preparation: de-interleave W1 into x/y halves, transpose,
# zero-pad K -> Kp and H -> Hp, cast the matmul weight to bf16.
# ---------------------------------------------------------------------------
def prepare_params(params):
    W1, b1 = params["W1"], params["b1"]               # (H, 2K), (H,)
    gamma, beta = params["gamma"], params["beta"]     # (H,), (H,)
    W2, b2 = params["W2"], params["b2"]               # (C, H), (C,)
    H, n_in = W1.shape
    K = n_in // 2
    C = W2.shape[0]
    Kp = _round_up(K, 128)                            # keypoint axis -> lanes
    # Lane-dense hidden dim; for large H pad to a 256 multiple to fill the MXU.
    Hp = _round_up(H, 128) if H <= 128 else _round_up(H, 256)

    # PyTorch feeds Linear with interleaved [x0,y0,x1,y1,...]; split the weight
    # columns so the kernel can consume the x‖y concatenated layout.
    Wx = jnp.pad(W1[:, 0::2].T, ((0, Kp - K), (0, Hp - H)))   # (Kp, Hp)
    Wy = jnp.pad(W1[:, 1::2].T, ((0, Kp - K), (0, Hp - H)))   # (Kp, Hp)
    return dict(
        W1p=jnp.concatenate([Wx, Wy], axis=0).astype(jnp.bfloat16),  # (2Kp, Hp)
        b1p=jnp.pad(b1, (0, Hp - H)).reshape(1, Hp).astype(jnp.float32),
        gamma=jnp.pad(gamma, (0, Hp - H)).reshape(1, Hp).astype(jnp.float32),
        beta=jnp.pad(beta, (0, Hp - H)).reshape(1, Hp).astype(jnp.float32),
        W2p=jnp.pad(W2.T, ((0, Hp - H), (0, 0))).astype(jnp.float32),  # (Hp, C)
        b2r=b2.reshape(1, C).astype(jnp.float32),
    )


# ---------------------------------------------------------------------------
# Per-call wrapper: one pad/concat pass over the activations + one pallas_call.
# ---------------------------------------------------------------------------
@partial(jax.jit, static_argnames=("t_chunk",))
def body_face_emotion_classifier(body, hand_right, hand_left, length, prep,
                                 *, t_chunk=8):
    B, T, _ = body.shape
    W1p, b1p = prep["W1p"], prep["b1p"]
    gamma, beta = prep["gamma"], prep["beta"]
    W2p, b2r = prep["W2p"], prep["b2r"]
    Kp = W1p.shape[0] // 2
    Hp = W1p.shape[1]
    C = b2r.shape[1]

    feats = jnp.concatenate([body, hand_right, hand_left], axis=2)
    K = feats.shape[2] // 3                           # number of keypoints (67)
    feats = feats.reshape(B, T, K, 3)

    Tc = max(8, _round_up(t_chunk, 8))                # frames per grid chunk
    T_pad = _round_up(T, Tc)
    pad_t, pad_k = T_pad - T, Kp - K

    # Single pad+concat pass producing the bf16 streams (XLA fuses this glue).
    x = jnp.pad(feats[..., 0], ((0, 0), (0, pad_t), (0, pad_k)))
    y = jnp.pad(feats[..., 1], ((0, 0), (0, pad_t), (0, pad_k)))
    c = jnp.pad(feats[..., 2], ((0, 0), (0, pad_t), (0, pad_k)))
    pos = jnp.concatenate([x, y], axis=-1).astype(jnp.bfloat16)  # (B,T_pad,2Kp)
    conf = c.astype(jnp.bfloat16)                                # (B,T_pad,Kp)
    len_col = length.astype(jnp.float32).reshape(B, 1)

    n_chunks = T_pad // Tc
    cost = pl.CostEstimate(
        flops=2 * B * T_pad * (2 * Kp) * Hp + 2 * B * Hp * C,
        transcendentals=Hp + B,
        bytes_accessed=int(2 * pos.size + 2 * conf.size + 2 * W1p.size
                           + 4 * (b1p.size + gamma.size + beta.size
                                  + W2p.size + b2r.size + len_col.size
                                  + B * C)),
    )

    kernel = partial(_fused_kernel, t_total=T, t_pad=T_pad)
    return pl.pallas_call(
        kernel,
        out_shape=jax.ShapeDtypeStruct((B, C), jnp.float32),
        grid=(n_chunks,),
        in_specs=[
            pl.BlockSpec((B, Tc, 2 * Kp), lambda t: (0, t, 0)),   # pos
            pl.BlockSpec((B, Tc, Kp), lambda t: (0, t, 0)),       # conf
            pl.BlockSpec((B, 1), lambda t: (0, 0)),               # lengths
            pl.BlockSpec((2 * Kp, Hp), lambda t: (0, 0)),          # W1
            pl.BlockSpec((1, Hp), lambda t: (0, 0)),               # b1
            pl.BlockSpec((1, Hp), lambda t: (0, 0)),               # gamma
            pl.BlockSpec((1, Hp), lambda t: (0, 0)),               # beta
            pl.BlockSpec((Hp, C), lambda t: (0, 0)),               # W2
            pl.BlockSpec((1, C), lambda t: (0, 0)),                # b2
        ],
        out_specs=pl.BlockSpec((B, C), lambda t: (0, 0)),
        scratch_shapes=[pltpu.VMEM((B, Hp), jnp.float32)],
        compiler_params=pltpu.CompilerParams(
            dimension_semantics=("arbitrary",),
            vmem_limit_bytes=32 * 1024 * 1024,
        ),
        cost_estimate=cost,
    )(pos, conf, len_col, W1p, b1p, gamma, beta, W2p, b2r)


# ---------------------------------------------------------------------------
# Pure-JAX reference mirroring the PyTorch forward, with the same bf16
# quantization of the first-layer operands as the kernel (everything else f32).
# ---------------------------------------------------------------------------
def reference_forward(body, hand_right, hand_left, length, params):
    B, T, _ = body.shape
    feats = jnp.concatenate([body, hand_right, hand_left], axis=2)
    feats = feats.reshape(B, T, -1, 3)
    x = feats[..., 0].astype(jnp.bfloat16)
    y = feats[..., 1].astype(jnp.bfloat16)
    c = feats[..., 2].astype(jnp.bfloat16)
    m = (c > CONF_THRESHOLD).astype(jnp.bfloat16)
    pos = jnp.stack([x * m, y * m], axis=3).reshape(B * T, -1)   # interleaved
    W1 = params["W1"].astype(jnp.bfloat16)
    z = jnp.dot(pos, W1.T, preferred_element_type=jnp.float32) + params["b1"]
    h = jax.nn.relu(z).reshape(B, T, -1)
    pooled = jnp.sum(h, axis=1) / length[:, None].astype(jnp.float32)
    mean = jnp.mean(pooled, axis=0, keepdims=True)
    var = jnp.mean((pooled - mean) ** 2, axis=0, keepdims=True)
    xn = (pooled - mean) / jnp.sqrt(var + BN_EPS)
    yb = xn * params["gamma"] + params["beta"]
    return jnp.dot(yb, params["W2"].T) + params["b2"]


if __name__ == "__main__":
    B, T = 4, 12          # T=12 with Tc=8 -> 2-chunk grid, exercises frame mask
    H = 32                # first_layer_size
    C = 7                 # num_classes
    # body: 25 joints * 3 = 75, each hand: 21 joints * 3 = 63 -> 67 keypoints
    key = jax.random.PRNGKey(0)
    ks = jax.random.split(key, 9)
    body = jax.random.uniform(ks[0], (B, T, 75), dtype=jnp.float32)
    hand_right = jax.random.uniform(ks[1], (B, T, 63), dtype=jnp.float32)
    hand_left = jax.random.uniform(ks[2], (B, T, 63), dtype=jnp.float32)
    length = jnp.array([12, 7, 9, 4], dtype=jnp.int32)

    n_in = 2 * ((75 + 63 + 63) // 3)   # 134, matches nn.Linear(42+42+50, H)
    params = dict(
        W1=0.1 * jax.random.normal(ks[3], (H, n_in), dtype=jnp.float32),
        b1=0.1 * jax.random.normal(ks[4], (H,), dtype=jnp.float32),
        gamma=1.0 + 0.1 * jax.random.normal(ks[5], (H,), dtype=jnp.float32),
        beta=0.1 * jax.random.normal(ks[6], (H,), dtype=jnp.float32),
        W2=0.1 * jax.random.normal(ks[7], (C, H), dtype=jnp.float32),
        b2=0.1 * jax.random.normal(ks[8], (C,), dtype=jnp.float32),
    )

    prep = prepare_params(params)      # one-time weight re-layout
    out = body_face_emotion_classifier(body, hand_right, hand_left, length,
                                       prep)
    out = jax.block_until_ready(out)

    ref = reference_forward(body, hand_right, hand_left, length, params)
    np.testing.assert_allclose(np.asarray(out), np.asarray(ref),
                               rtol=1e-3, atol=1e-3)
    print("KERNEL_OK")
</pallas_src>

<mosaic_0001>
module attributes {stable_mosaic.version = 11 : i64} {
  func.func @_fused_kernel(%arg0: i32, %arg1: memref<4x8x256xbf16, #tpu.memory_space<vmem>>, %arg2: memref<4x8x128xbf16, #tpu.memory_space<vmem>>, %arg3: memref<4x1xf32, #tpu.memory_space<vmem>>, %arg4: memref<256x128xbf16, #tpu.memory_space<vmem>>, %arg5: memref<1x128xf32, #tpu.memory_space<vmem>>, %arg6: memref<1x128xf32, #tpu.memory_space<vmem>>, %arg7: memref<1x128xf32, #tpu.memory_space<vmem>>, %arg8: memref<128x7xf32, #tpu.memory_space<vmem>>, %arg9: memref<1x7xf32, #tpu.memory_space<vmem>>, %arg10: memref<4x7xf32, #tpu.memory_space<vmem>>, %arg11: memref<4x128xf32, #tpu.memory_space<vmem>>) attributes {dimension_semantics = [#tpu.dimension_semantics<arbitrary>], iteration_bounds = array<i64: 2>, scalar_prefetch = 0 : i64, scratch_operands = 1 : i64, tpu.core_type = #tpu.core_type<tc>, window_params = [{transform_indices = @transform_0, window_bounds = array<i64: 4, 8, 256>}, {transform_indices = @transform_1, window_bounds = array<i64: 4, 8, 128>}, {pipeline_mode = #tpu.pipeline_mode<synchronous>, transform_indices = @transform_2, window_bounds = array<i64: 4, 1>}, {pipeline_mode = #tpu.pipeline_mode<synchronous>, transform_indices = @transform_3, window_bounds = array<i64: 256, 128>}, {pipeline_mode = #tpu.pipeline_mode<synchronous>, transform_indices = @transform_4, window_bounds = array<i64: 1, 128>}, {pipeline_mode = #tpu.pipeline_mode<synchronous>, transform_indices = @transform_5, window_bounds = array<i64: 1, 128>}, {pipeline_mode = #tpu.pipeline_mode<synchronous>, transform_indices = @transform_6, window_bounds = array<i64: 1, 128>}, {pipeline_mode = #tpu.pipeline_mode<synchronous>, transform_indices = @transform_7, window_bounds = array<i64: 128, 7>}, {pipeline_mode = #tpu.pipeline_mode<synchronous>, transform_indices = @transform_8, window_bounds = array<i64: 1, 7>}, {pipeline_mode = #tpu.pipeline_mode<synchronous>, transform_indices = @transform_9, window_bounds = array<i64: 4, 7>}]} {
    %c0_i32 = arith.constant 0 : i32
    %0 = arith.cmpi eq, %arg0, %c0_i32 : i32
    %1 = arith.extui %0 : i1 to i32
    %c0_i32_0 = arith.constant 0 : i32
    %2 = arith.cmpi ne, %1, %c0_i32_0 : i32
    scf.if %2 {
      %cst_19 = arith.constant 0.000000e+00 : f32
      %41 = vector.broadcast %cst_19 : f32 to vector<4x128xf32>
      %c0_20 = arith.constant 0 : index
      %c0_21 = arith.constant 0 : index
      %42 = vector.load %arg11[%c0_20, %c0_21] : memref<4x128xf32, #tpu.memory_space<vmem>>, vector<4x128xf32>
      tpu.vector_store %arg11[%c0_20, %c0_21], %41 {strides = array<i32>} : memref<4x128xf32, #tpu.memory_space<vmem>>, vector<4x128xf32>,
    } else {
    }
    %c0 = arith.constant 0 : index
    %c0_1 = arith.constant 0 : index
    %c0_2 = arith.constant 0 : index
    %3 = vector.load %arg1[%c0, %c0_1, %c0_2] : memref<4x8x256xbf16, #tpu.memory_space<vmem>>, vector<4x8x256xbf16>
    %c0_3 = arith.constant 0 : index
    %c0_4 = arith.constant 0 : index
    %c0_5 = arith.constant 0 : index
    %4 = vector.load %arg2[%c0_3, %c0_4, %c0_5] : memref<4x8x128xbf16, #tpu.memory_space<vmem>>, vector<4x8x128xbf16>
    %cst = arith.constant 1.000980e-01 : bf16
    %5 = vector.broadcast %cst : bf16 to vector<4x8x128xbf16>
    %6 = arith.cmpf ogt, %4, %5 : vector<4x8x128xbf16>
    %7 = arith.extui %6 : vector<4x8x128xi1> to vector<4x8x128xi32>
    %8 = arith.sitofp %7 : vector<4x8x128xi32> to vector<4x8x128xf32>
    %9 = arith.truncf %8 : vector<4x8x128xf32> to vector<4x8x128xbf16>
    %10 = vector.extract_strided_slice %3 {offsets = [0, 0, 0], sizes = [4, 8, 128], strides = [1, 1, 1]} : vector<4x8x256xbf16> to vector<4x8x128xbf16>
    %11 = arith.mulf %10, %9 : vector<4x8x128xbf16>
    %12 = vector.extract_strided_slice %3 {offsets = [0, 0, 128], sizes = [4, 8, 128], strides = [1, 1, 1]} : vector<4x8x256xbf16> to vector<4x8x128xbf16>
    %13 = arith.mulf %12, %9 : vector<4x8x128xbf16>
    %14 = tpu.concatenate %11, %13 in 2 : vector<4x8x128xbf16>, vector<4x8x128xbf16> -> vector<4x8x256xbf16>
    %15 = vector.shape_cast %14 : vector<4x8x256xbf16> to vector<32x256xbf16>
    %c0_6 = arith.constant 0 : index
    %c0_7 = arith.constant 0 : index
    %16 = vector.load %arg4[%c0_6, %c0_7] : memref<256x128xbf16, #tpu.memory_space<vmem>>, vector<256x128xbf16>
    %cst_8 = arith.constant dense<0.000000e+00> : vector<32x128xf32>
    %17 = tpu.matmul %15, %16, %cst_8 {dimension_numbers = #tpu.dot_dimension_numbers<[1], [0], [0], [1], [0, 0, 1, 1], [], []>} : vector<32x256xbf16>, vector<256x128xbf16>, vector<32x128xf32> -> vector<32x128xf32>
    %c0_9 = arith.constant 0 : index
    %c0_10 = arith.constant 0 : index
    %18 = vector.load %arg5[%c0_9, %c0_10] : memref<1x128xf32, #tpu.memory_space<vmem>>, vector<1x128xf32>
    %19 = vector.broadcast %18 : vector<1x128xf32> to vector<32x128xf32>
    %20 = arith.addf %17, %19 : vector<32x128xf32>
    %cst_11 = arith.constant 0.000000e+00 : f32
    %21 = vector.broadcast %cst_11 : f32 to vector<32x128xf32>
    %22 = arith.maximumf %20, %21 : vector<32x128xf32>
    %23 = vector.shape_cast %22 : vector<32x128xf32> to vector<4x8x128xf32>
    %c8_i32 = arith.constant 8 : i32
    %24 = arith.muli %arg0, %c8_i32 : i32
    %25 = tpu.iota {dimensions = array<i32: 1>} : vector<1x8x1xi32>
    %26 = vector.broadcast %24 : i32 to vector<1x8x1xi32>
    %27 = arith.addi %26, %25 : vector<1x8x1xi32>
    %c12_i32 = arith.constant 12 : i32
    %28 = vector.broadcast %c12_i32 : i32 to vector<1x8x1xi32>
    %29 = arith.cmpi slt, %27, %28 : vector<1x8x1xi32>
    %cst_12 = arith.constant 0.000000e+00 : f32
    %30 = vector.shape_cast %29 : vector<1x8x1xi1> to vector<1x8x1xi1>
    %31 = vector.broadcast %30 : vector<1x8x1xi1> to vector<4x8x128xi1>
    %32 = vector.broadcast %cst_12 : f32 to vector<4x8x128xf32>
    %33 = arith.select %31, %23, %32 : vector<4x8x128xi1>, vector<4x8x128xf32>
    %c0_13 = arith.constant 0 : index
    %c0_14 = arith.constant 0 : index
    %34 = vector.load %arg11[%c0_13, %c0_14] : memref<4x128xf32, #tpu.memory_space<vmem>>, vector<4x128xf32>
    %cst_15 = arith.constant dense<0.000000e+00> : vector<4x128xf32>
    %35 = vector.multi_reduction <add>, %33, %cst_15 [1] : vector<4x8x128xf32> to vector<4x128xf32>
    %36 = arith.addf %34, %35 : vector<4x128xf32>
    %c0_16 = arith.constant 0 : index
    %c0_17 = arith.constant 0 : index
    %37 = vector.load %arg11[%c0_16, %c0_17] : memref<4x128xf32, #tpu.memory_space<vmem>>, vector<4x128xf32>
    tpu.vector_store %arg11[%c0_16, %c0_17], %36 {strides = array<i32>} : memref<4x128xf32, #tpu.memory_space<vmem>>, vector<4x128xf32>,
    %c1_i32 = arith.constant 1 : i32
    %38 = arith.cmpi eq, %arg0, %c1_i32 : i32
    %39 = arith.extui %38 : i1 to i32
    %c0_i32_18 = arith.constant 0 : i32
    %40 = arith.cmpi ne, %39, %c0_i32_18 : i32
    scf.if %40 {
      %c0_19 = arith.constant 0 : index
      %c0_20 = arith.constant 0 : index
      %41 = vector.load %arg3[%c0_19, %c0_20] : memref<4x1xf32, #tpu.memory_space<vmem>>, vector<4x1xf32>
      %42 = tpu.reciprocal %41 : vector<4x1xf32> -> vector<4x1xf32>
      %c0_21 = arith.constant 0 : index
      %c0_22 = arith.constant 0 : index
      %43 = vector.load %arg11[%c0_21, %c0_22] : memref<4x128xf32, #tpu.memory_space<vmem>>, vector<4x128xf32>
      %44 = vector.broadcast %42 : vector<4x1xf32> to vector<4x128xf32>
      %45 = arith.mulf %43, %44 : vector<4x128xf32>
      %cst_23 = arith.constant dense<0.000000e+00> : vector<128xf32>
      %46 = vector.multi_reduction <add>, %45, %cst_23 [0] : vector<4x128xf32> to vector<128xf32>
      %47 = vector.shape_cast %46 : vector<128xf32> to vector<1x128xf32>
      %cst_24 = arith.constant 4.000000e+00 : f32
      %48 = vector.broadcast %cst_24 : f32 to vector<1x128xf32>
      %49 = arith.divf %47, %48 : vector<1x128xf32>
      %50 = vector.broadcast %49 : vector<1x128xf32> to vector<4x128xf32>
      %51 = arith.subf %45, %50 : vector<4x128xf32>
      %52 = arith.mulf %51, %51 : vector<4x128xf32>
      %cst_25 = arith.constant dense<0.000000e+00> : vector<128xf32>
      %53 = vector.multi_reduction <add>, %52, %cst_25 [0] : vector<4x128xf32> to vector<128xf32>
      %54 = vector.shape_cast %53 : vector<128xf32> to vector<1x128xf32>
      %cst_26 = arith.constant 4.000000e+00 : f32
      %55 = vector.broadcast %cst_26 : f32 to vector<1x128xf32>
      %56 = arith.divf %54, %55 : vector<1x128xf32>
      %cst_27 = arith.constant 9.99999974E-6 : f32
      %57 = vector.broadcast %cst_27 : f32 to vector<1x128xf32>
      %58 = arith.addf %56, %57 : vector<1x128xf32>
      %59 = math.rsqrt %58 : vector<1x128xf32>
      %60 = vector.broadcast %49 : vector<1x128xf32> to vector<4x128xf32>
      %61 = arith.subf %45, %60 : vector<4x128xf32>
      %62 = vector.broadcast %59 : vector<1x128xf32> to vector<4x128xf32>
      %63 = arith.mulf %61, %62 : vector<4x128xf32>
      %c0_28 = arith.constant 0 : index
      %c0_29 = arith.constant 0 : index
      %64 = vector.load %arg6[%c0_28, %c0_29] : memref<1x128xf32, #tpu.memory_space<vmem>>, vector<1x128xf32>
      %65 = vector.broadcast %64 : vector<1x128xf32> to vector<4x128xf32>
      %66 = arith.mulf %63, %65 : vector<4x128xf32>
      %c0_30 = arith.constant 0 : index
      %c0_31 = arith.constant 0 : index
      %67 = vector.load %arg7[%c0_30, %c0_31] : memref<1x128xf32, #tpu.memory_space<vmem>>, vector<1x128xf32>
      %68 = vector.broadcast %67 : vector<1x128xf32> to vector<4x128xf32>
      %69 = arith.addf %66, %68 : vector<4x128xf32>
      %c0_32 = arith.constant 0 : index
      %c0_33 = arith.constant 0 : index
      %70 = vector.load %arg8[%c0_32, %c0_33] : memref<128x7xf32, #tpu.memory_space<vmem>>, vector<128x7xf32>
      %cst_34 = arith.constant dense<0.000000e+00> : vector<4x7xf32>
      %71 = tpu.matmul %69, %70, %cst_34 {dimension_numbers = #tpu.dot_dimension_numbers<[1], [0], [0], [1], [0, 0, 1, 1], [], []>} : vector<4x128xf32>, vector<128x7xf32>, vector<4x7xf32> -> vector<4x7xf32>
      %c0_35 = arith.constant 0 : index
      %c0_36 = arith.constant 0 : index
      %72 = vector.load %arg9[%c0_35, %c0_36] : memref<1x7xf32, #tpu.memory_space<vmem>>, vector<1x7xf32>
      %73 = vector.broadcast %72 : vector<1x7xf32> to vector<4x7xf32>
      %74 = arith.addf %71, %73 : vector<4x7xf32>
      %c0_37 = arith.constant 0 : index
      %c0_38 = arith.constant 0 : index
      %75 = vector.load %arg10[%c0_37, %c0_38] : memref<4x7xf32, #tpu.memory_space<vmem>>, vector<4x7xf32>
      tpu.vector_store %arg10[%c0_37, %c0_38], %74 {strides = array<i32>} : memref<4x7xf32, #tpu.memory_space<vmem>>, vector<4x7xf32>,
    } else {
    }
    return
  }
  func.func @transform_0(%arg0: i32) -> (i32, i32, i32) {
    %c0_i32 = arith.constant 0 : i32
    %c0_i32_0 = arith.constant 0 : i32
    %c0_i32_1 = arith.constant 0 : i32
    return %c0_i32, %arg0, %c0_i32_0 : i32, i32, i32
  }
  func.func @transform_1(%arg0: i32) -> (i32, i32, i32) {
    %c0_i32 = arith.constant 0 : i32
    %c0_i32_0 = arith.constant 0 : i32
    %c0_i32_1 = arith.constant 0 : i32
    return %c0_i32, %arg0, %c0_i32_0 : i32, i32, i32
  }
  func.func @transform_2(%arg0: i32) -> (i32, i32) {
    %c0_i32 = arith.constant 0 : i32
    %c0_i32_0 = arith.constant 0 : i32
    %c0_i32_1 = arith.constant 0 : i32
    return %c0_i32, %c0_i32_0 : i32, i32
  }
  func.func @transform_3(%arg0: i32) -> (i32, i32) {
    %c0_i32 = arith.constant 0 : i32
    %c0_i32_0 = arith.constant 0 : i32
    %c0_i32_1 = arith.constant 0 : i32
    return %c0_i32, %c0_i32_0 : i32, i32
  }
  func.func @transform_4(%arg0: i32) -> (i32, i32) {
    %c0_i32 = arith.constant 0 : i32
    %c0_i32_0 = arith.constant 0 : i32
    %c0_i32_1 = arith.constant 0 : i32
    return %c0_i32, %c0_i32_0 : i32, i32
  }
  func.func @transform_5(%arg0: i32) -> (i32, i32) {
    %c0_i32 = arith.constant 0 : i32
    %c0_i32_0 = arith.constant 0 : i32
    %c0_i32_1 = arith.constant 0 : i32
    return %c0_i32, %c0_i32_0 : i32, i32
  }
  func.func @transform_6(%arg0: i32) -> (i32, i32) {
    %c0_i32 = arith.constant 0 : i32
    %c0_i32_0 = arith.constant 0 : i32
    %c0_i32_1 = arith.constant 0 : i32
    return %c0_i32, %c0_i32_0 : i32, i32
  }
  func.func @transform_7(%arg0: i32) -> (i32, i32) {
    %c0_i32 = arith.constant 0 : i32
    %c0_i32_0 = arith.constant 0 : i32
    %c0_i32_1 = arith.constant 0 : i32
    return %c0_i32, %c0_i32_0 : i32, i32
  }
  func.func @transform_8(%arg0: i32) -> (i32, i32) {
    %c0_i32 = arith.constant 0 : i32
    %c0_i32_0 = arith.constant 0 : i32
    %c0_i32_1 = arith.constant 0 : i32
    return %c0_i32, %c0_i32_0 : i32, i32
  }
  func.func @transform_9(%arg0: i32) -> (i32, i32) {
    %c0_i32 = arith.constant 0 : i32
    %c0_i32_0 = arith.constant 0 : i32
    %c0_i32_1 = arith.constant 0 : i32
    return %c0_i32, %c0_i32_0 : i32, i32
  }
}

</mosaic_0001>

<bundles_post_ra>
// kernel: body_face_emotion_classifier.1
= control target key start
LH: loop header
LB: loop body
LE: loop exit
PB: predicated region body
PF: predicated region fallthrough
CT: control target
= control target key end

     0   :  { %14 = vsyncpa [#allocation6], 0  ;;  %s1321_s30 = smov 0   ;;  %s1323_s10 = smov 0   ;;  %s1536_s0 = inlined_call_operand.vmem [shape: bf16[4,16,256], index: 0, kind: input, shape index: {}]   ;;  %s1537_s1 = inlined_call_operand.vmem [shape: bf16[4,16,128], index: 1, kind: input, shape index: {}]   ;;  %s1538_s2 = inlined_call_operand.vmem [shape: f32[4,1], index: 2, kind: input, shape index: {}]   ;;  %s1539_s3 = inlined_call_operand.vmem [shape: bf16[256,128], index: 3, kind: input, shape index: {}]   ;;  %s1540_s4 = inlined_call_operand.vmem [shape: f32[1,128], index: 4, kind: input, shape index: {}]   ;;  %s1541_s5 = inlined_call_operand.vmem [shape: f32[1,128], index: 5, kind: input, shape index: {}]   ;;  %s1542_s6 = inlined_call_operand.vmem [shape: f32[1,128], index: 6, kind: input, shape index: {}]   ;;  %s1543_s7 = inlined_call_operand.vmem [shape: f32[128,7], index: 7, kind: input, shape index: {}]   ;;  %s1544_s8 = inlined_call_operand.vmem [shape: f32[1,7], index: 8, kind: input, shape index: {}]   ;;  %s1545_s9 = inlined_call_operand.hbm [shape: f32[4,7], index: 9, kind: output, shape index: {}]  }
   0x1   :  { %s1325_s11 = smov 0  }
   0x2 LB: > { %s1337_s12 = sadd.s32 4294967295, %s1261_s11   ;;  %s1340_s13 = sadd.s32 1, %s1261_s11   ;;  %s1261_s11 = sphi %s1325_s11, %s1549_s11   ;;  %s1257_s10 = sphi %s1323_s10, %s1548_s10   ;;  %s1253_s30 = sphi %s1321_s30, %s1547_s30  }
   0x3   : > { %s24_s14 = ssub.s32 %s1261_s11, %s1340_s13  ;;  %s27_s15 = sadd.s32 1, %s1257_s10 }
   0x4   : > { %p25_p0 = scmp.eq.s32.totalorder %s24_s14, 0  ;;  %p34_p1 = scmp.ne.s32.totalorder %s1257_s10, %s1253_s30 }
   0x5   : > { %p35_p2 = scmp.eq.s32.totalorder %s1261_s11, 0  ;;  %p985_p4 = scmp.ge.s32.totalorder %s1261_s11, 2 }
   0x6   : > { %s1349_s16 = scalar_select %p25_p0, %s1257_s10, %s27_s15  }
   0x7   : > { %p1351_p3 = por %p35_p2, %p34_p1  ;;  %275 = sbr.rel (%p985_p4) target bundleno = 28 (0x1c), region = 44 }
   0xe   : > { %278 = sbr.rel (!%p1351_p3) target bundleno = 21 (0x15), region = 48  ;;  %s280_s18 = sand.u32 (%p1351_p3), 1, %s1257_s10  }
   0xf   : > { %s1029_s19 = sshll.u32 (%p1351_p3), %s1261_s11, 3  ;;  %s986_s20 = sshll.u32 (%p1351_p3), %s280_s18, 5 }
  0x10   : > { %s285_s23 = scalar_lea.vmem (%p1351_p3), %s1536_s0, %s1029_s19  ;;  %s282_s24 = scalar_lea.vmem (%p1351_p3), [#allocation3], %s986_s20 }
  0x11   : > { %v319_v0 = vld [vmem:[%s285_s23] sm:$0xff] (%p1351_p3)  ;;  %v321_v1 = vld [vmem:[%s285_s23 + $0x10] sm:$0xff] (%p1351_p3) }
  0x12   : > { %v323_v2 = vld [vmem:[%s285_s23 + $0x20] sm:$0xff] (%p1351_p3)  ;;  %320 = vst [vmem:[%s282_s24] sm:$0xff] (%p1351_p3), %v319_v0  ;;  %322 = vst [vmem:[%s282_s24 + $0x8] sm:$0xff] (%p1351_p3), %v321_v1  ;;  %v325_v3 = vld [vmem:[%s285_s23 + $0x30] sm:$0xff] (%p1351_p3) }
  0x13   : > { %324 = vst [vmem:[%s282_s24 + $0x10] sm:$0xff] (%p1351_p3), %v323_v2  ;;  %326 = vst [vmem:[%s282_s24 + $0x18] sm:$0xff] (%p1351_p3), %v325_v3 }
  0x15 PF: > { %332 = sbr.rel (!%p1351_p3) target bundleno = 28 (0x1c), region = 86  ;;  %s334_s25 = sand.u32 (%p1351_p3), 1, %s1257_s10  }
  0x16   : > { %s990_s26 = sshll.u32 (%p1351_p3), %s1261_s11, 2  ;;  %s989_s27 = sshll.u32 (%p1351_p3), %s334_s25, 4 }
  0x17   : > { %s338_s14 = scalar_lea.vmem (%p1351_p3), %s1537_s1, %s990_s26  ;;  %s336_s15 = scalar_lea.vmem (%p1351_p3), [#allocation4], %s989_s27 }
  0x18   : > { %v354_v4 = vld [vmem:[%s338_s14] sm:$0xf] (%p1351_p3)  ;;  %v356_v5 = vld [vmem:[%s338_s14 + $0x8] sm:$0xf] (%p1351_p3)  ;;  %v358_v6 = vld [vmem:[%s338_s14 + $0x10] sm:$0xf] (%p1351_p3) }
  0x19   : > { %355 = vst [vmem:[%s336_s15] sm:$0xf] (%p1351_p3), %v354_v4  ;;  %357 = vst [vmem:[%s336_s15 + $0x4] sm:$0xf] (%p1351_p3), %v356_v5  ;;  %v360_v7 = vld [vmem:[%s338_s14 + $0x18] sm:$0xf] (%p1351_p3) }
  0x1a   : > { %359 = vst [vmem:[%s336_s15 + $0x8] sm:$0xf] (%p1351_p3), %v358_v6  ;;  %361 = vst [vmem:[%s336_s15 + $0xc] sm:$0xf] (%p1351_p3), %v360_v7 }
  0x1c PF: > { %p991_p5 = scmp.ge.s32.totalorder %s1261_s11, 1  ;;  %p391_p6 = scmp.lt.s32.totalorder %s1261_s11, 3 }
  0x1e   : > { %p392_p7 = pnand %p991_p5, %p391_p6 }
  0x1f   : > { %s398_s17 = sand.u32 (!%p392_p7), 1, %s1253_s30   ;;  %p994_p8 = scmp.ne.s32.totalorder (!%p392_p7), %s1337_s12, 0 }
  0x20   : > { %395 = sbr.rel (%p392_p7) target bundleno = 621 (0x26d), region = 127  ;;  %s992_s18 = sshll.u32 (!%p392_p7), %s398_s17, 5 }
  0x21   : > { %s993_s19 = sshll.u32 (!%p392_p7), %s398_s17, 4  ;;  %s1373_s20 = scalar_lea.vmem (!%p392_p7), [#allocation3], %s992_s18 }
  0x22   : > { %s1375_s21 = scalar_lea.vmem (!%p392_p7), [#allocation4], %s993_s19 }
  0x27   : > { %446 = sbr.rel (%p994_p8) target bundleno = 46 (0x2e), region = 139  ;;  %v1263_v8 = vmov (!%p994_p8), 0.0  }
  0x28   : > { %447 = vst [vmem:[#allocation2] sm:$0xf] (!%p994_p8), %v1263_v8 }
  0x2e PF: > { %v1188_v9 = vld [vmem:[%s1539_s3 + $0x40] sm:$0xff]   ;;  %v1190_v11 = vld [vmem:[%s1539_s3 + $0x48] sm:$0xff]   ;;  %v1192_v13 = vld [vmem:[%s1539_s3 + $0x50] sm:$0xff]   ;;  %v1264_v25 = vmov 0   ;;  %v1265_v39 = vmov 0.0   ;;  %v717_v3 = vlaneseq  ;;  %s1020_s22 = sshll.u32 %s1337_s12, 3 }
  0x2f   : > { %v1189_v10 = vld [vmem:[%s1539_s3] sm:$0xff]   ;;  %1030 = vmatprep.subr.bf16.mxu0 %v1188_v9  ;;  %1134 = vmatprep.subr.bf16.mxu1 %v1188_v9  ;;  %v1191_v12 = vld [vmem:[%s1539_s3 + $0x8] sm:$0xff]   ;;  %v1193_v14 = vld [vmem:[%s1539_s3 + $0x10] sm:$0xff]   ;;  %v719_v5 = vstv %s1020_s22  ;;  %vm757_vm9 = vcmask 1041409   ;;  %vm759_vm10 = vcmask 1042434   ;;  %vm761_vm11 = vcmask 1043459  }
  0x30   : > { %1031 = vmatpush3.bf16.msra.mxu0 %v1189_v10  ;;  %1142 = vmatpush3.bf16.msra.mxu1 %v1189_v10  ;;  %v1194_v15 = vld [vmem:[%s1539_s3 + $0x58] sm:$0xff]   ;;  %v1196_v17 = vld [vmem:[%s1539_s3 + $0x60] sm:$0xff]   ;;  %v1198_v19 = vld [vmem:[%s1539_s3 + $0x68] sm:$0xff]   ;;  %v718_v4 = vshrl.u32 %v717_v3, 7  ;;  %p1021_p9 = scmp.ne.s32.totalorder %s1337_s12, 1 }
  0x31   : > { %1032 = vmatprep.subr.bf16.mxu0 %v1190_v11  ;;  %1135 = vmatprep.subr.bf16.mxu1 %v1190_v11  ;;  %v1195_v16 = vld [vmem:[%s1539_s3 + $0x18] sm:$0xff]   ;;  %v1197_v18 = vld [vmem:[%s1539_s3 + $0x20] sm:$0xff]   ;;  %v1199_v23 = vld [vmem:[%s1539_s3 + $0x28] sm:$0xff]   ;;  %v1267_v3 = vmov (!%p1021_p9), 0.0|0.0   ;;  %vm1268_vm12 = vmmov (!%p1021_p9), 0   ;;  %vm779_vm13 = vcmask (!%p1021_p9), 1043456  }
  0x32   : > { %v452_v20 = vld [vmem:[%s1375_s21] sm:$0xf]  ;;  %v453_v22 = vld [vmem:[%s1375_s21 + $0x4] sm:$0xf]  ;;  %v449_v24 = vld [vmem:[%s1373_s20 + $0x8] sm:$0xff]  ;;  %v720_v10 = vadd.s32 %v719_v5, %v718_v4  ;;  %vm911_vm14 = vcmask (!%p1021_p9), 52224  }
  0x33   : > { %v1413_v21 = vld [vmem:[%s1373_s20] sm:$0xff]  ;;  %vm456_vm0 = vcmp.gt.bf16.partialorder %v452_v20, 1036860877  ;;  %vm457_vm1 = vcmp.gt.bf16.partialorder %v453_v22, 1036860877  ;;  %v1200_v27 = vld [vmem:[%s1539_s3 + $0x70] sm:$0xff]  }
  0x34   : > { %1033 = vmatpush3.bf16.msra.mxu0 %v1191_v12  ;;  %1143 = vmatpush3.bf16.msra.mxu1 %v1191_v12  ;;  %v460_v26 = vsel %vm456_vm0, 65537, %v1264_v25  ;;  %v461_v28 = vsel %vm457_vm1, 65537, %v1264_v25  ;;  %v454_v30 = vld [vmem:[%s1375_s21 + $0x8] sm:$0xf]  ;;  %v455_v31 = vld [vmem:[%s1375_s21 + $0xc] sm:$0xf] }
  0x35   : > { %1034 = vmatprep.subr.bf16.mxu0 %v1192_v13  ;;  %1136 = vmatprep.subr.bf16.mxu1 %v1192_v13  ;;  %v464_v29 = vunpack.c.l.b16 %v460_v26  ;;  %v465_v32 = vunpack.c.l.b16 %v461_v28  ;;  %v492_v33 = vrot.slane %v1413_v21, 4  ;;  %v450_v34 = vld [vmem:[%s1373_s20 + $0x10] sm:$0xff]  ;;  %vm458_vm2 = vcmp.gt.bf16.partialorder %v454_v30, 1036860877  ;;  %v451_v36 = vld [vmem:[%s1373_s20 + $0x18] sm:$0xff] }
  0x36   : > { %vm459_vm3 = vcmp.gt.bf16.partialorder %v455_v31, 1036860877  ;;  %v493_v35 = vrot.slane %v449_v24, 4  ;;  %v462_v37 = vsel %vm458_vm2, 65537, %v1264_v25  ;;  %v1201_v43 = vld [vmem:[%s1539_s3 + $0x30] sm:$0xff]   ;;  %v494_v46 = vrot.slane %v450_v34, 4 }
  0x37   : > { %vm468_vm4 = vcmp.ne.s32.totalorder %v464_v29, 0  ;;  %v463_v38 = vsel %vm459_vm3, 65537, %v1264_v25  ;;  %vm469_vm5 = vcmp.ne.s32.totalorder %v465_v32, 0  ;;  %v466_v41 = vunpack.c.l.b16 %v462_v37  ;;  %v1202_v47 = vld [vmem:[%s1539_s3 + $0x78] sm:$0xff]   ;;  %v999_v8 = vld [vmem:[%s1540_s4] ss:$0 sm:$0xff] }
  0x38   : > { %1035 = vmatpush3.bf16.msra.mxu0 %v1193_v14  ;;  %1144 = vmatpush3.bf16.msra.mxu1 %v1193_v14  ;;  %v995_v40 = vsel %vm468_vm4, 1.0, %v1265_v39  ;;  %v467_v42 = vunpack.c.l.b16 %v463_v38  ;;  %v996_v44 = vsel %vm469_vm5, 1.0, %v1265_v39  ;;  %v495_v49 = vrot.slane %v451_v36, 4  ;;  %v1203_v58 = vld [vmem:[%s1539_s3 + $0x38] sm:$0xff]   ;;  %v820_v4 = vld [vmem:[%s1543_s7 + $0x10] sm:$0xff] (!%p1021_p9) }
  0x39   : > { %1036 = vmatprep.subr.bf16.mxu0 %v1194_v15  ;;  %1137 = vmatprep.subr.bf16.mxu1 %v1194_v15  ;;  %v480_v45 = vpack.c.bf16 %v995_v40, %v995_v40  ;;  %v481_v48 = vpack.c.bf16 %v996_v44, %v996_v44  ;;  %vm470_vm6 = vcmp.ne.s32.totalorder %v466_v41, 0  ;;  %vm721_vm8 = vcmp.lt.s32.totalorder %v720_v10, 12  ;;  %v821_v5 = vld [vmem:[%s1543_s7 + $0x18] sm:$0xff] (!%p1021_p9)  ;;  %v824_v10 = vld [vmem:[%s1543_s7 + $0x30] sm:$0xff] (!%p1021_p9) }
  0x3a   : > { %vm471_vm7 = vcmp.ne.s32.totalorder %v467_v42, 0  ;;  %v997_v51 = vsel %vm470_vm6, 1.0, %v1265_v39 }
  0x3b   : > { %v500_v50 = vmul.bf16 %v492_v33, %v480_v45  ;;  %v998_v52 = vsel %vm471_vm7, 1.0, %v1265_v39  ;;  %v484_v53 = vmul.bf16 %v480_v45, %v1413_v21  ;;  %v501_v54 = vmul.bf16 %v493_v35, %v481_v48 }
  0x3c   : > { %1037 = vmatpush3.bf16.msra.mxu0 %v1195_v16  ;;  %1145 = vmatpush3.bf16.msra.mxu1 %v1195_v16  ;;  %v482_v55 = vpack.c.bf16 %v997_v51, %v997_v51  ;;  %v483_v56 = vpack.c.bf16 %v998_v52, %v998_v52  ;;  %v485_v57 = vmul.bf16 %v481_v48, %v449_v24 }
  0x3d   : > { %1038 = vmatprep.subr.bf16.mxu0 %v1196_v17  ;;  %1138 = vmatprep.subr.bf16.mxu1 %v1196_v17  ;;  %v1001_v59 = vcombine.low %v500_v50, %v501_v54 }
  0x3e   : > { %v502_v60 = vmul.bf16 %v494_v46, %v482_v55  ;;  %v503_v61 = vmul.bf16 %v495_v49, %v483_v56  ;;  %v486_v62 = vmul.bf16 %v482_v55, %v450_v34  ;;  %v487_v63 = vmul.bf16 %v483_v56, %v451_v36  ;;  %v728_v56 = vld [vmem:[#allocation2] sm:$0xf] }
  0x3f   : > { %695 = vmatprep.mubr.bf16.mxu0 %v1001_v59  ;;  %v1000_v1 = vcombine.low %v484_v53, %v485_v57 }
  0x40   : > { %1039 = vmatpush3.bf16.msra.mxu0 %v1197_v18  ;;  %1146 = vmatpush3.bf16.msra.mxu1 %v1197_v18  ;;  %v1003_v0 = vcombine.low %v502_v60, %v503_v61  ;;  %v1002_v2 = vcombine.low %v486_v62, %v487_v63  ;;  %v770_v61 = vld [vmem:[%s1538_s2] sm:$0xf] (!%p1021_p9)  ;;  %v1266_v62 = vmov (!%p1021_p9), 0  }
  0x41   : > { %1040 = vmatprep.subr.bf16.mxu0 %v1198_v19  ;;  %1139 = vmatprep.subr.bf16.mxu1 %v1198_v19  ;;  %1205 = vrcp.f32 (!%p1021_p9), %v770_v61 }
  0x42   : > { %703 = vmatprep.mubr.bf16.mxu1 %v1003_v0  ;;  %1204 = vset.pattern.permute.xlu0 (!%p1021_p9), %v1266_v62  ;;  %v818_v0 = vld [vmem:[%s1543_s7] sm:$0xff] (!%p1021_p9) }
  0x44   : > { %1041 = vmatpush3.bf16.msra.mxu0 %v1199_v23  ;;  %1147 = vmatpush3.bf16.msra.mxu1 %v1199_v23 }
  0x45   : > { %1042 = vmatprep.subr.bf16.mxu0 %v1200_v27  ;;  %1140 = vmatprep.subr.bf16.mxu1 %v1200_v27 }
  0x48   : > { %1043 = vmatpush3.bf16.msra.mxu0 %v1201_v43  ;;  %1148 = vmatpush3.bf16.msra.mxu1 %v1201_v43 }
  0x49   : > { %1044 = vmatprep.subr.bf16.mxu0 %v1202_v47  ;;  %1141 = vmatprep.subr.bf16.mxu1 %v1202_v47 }
  0x4b   : > { %v1206_v63 = vpop.eup (!%p1021_p9), %1205 }
  0x4c   : > { %1045 = vmatpush3.bf16.msra.mxu0 %v1203_v58  ;;  %1149 = vmatpush3.bf16.msra.mxu1 %v1203_v58 }
  0x4d   : > { %775 = vperm.xlu0 (!%p1021_p9), %1204, %v1206_v63   ;;  %1110 = vmatprep.subr.bf16.mxu0 (!%p1021_p9), %v1267_v3 }
  0x4f   : > { %696 = vmatmul.mubr.bf16.vlgmr.msra.gmra.mrb[0].mxu0 %v1000_v1  ;;  %704 = vmatmul.mubr.bf16.vlgmr.msra.gmra.mrb[0].mxu1 %v1002_v2  ;;  %v819_v1 = vld [vmem:[%s1543_s7 + $0x8] sm:$0xff] (!%p1021_p9) }
  0x50   : > { %v1111_v2 = vpack.c.bf16 (!%p1021_p9), %v819_v1, %v818_v0 }
  0x52   : > { %1112 = vmatpush3.bf16.msra.mxu0 (!%p1021_p9), %v1111_v2 }
  0x53   : > { %1113 = vmatprep.subr.bf16.mxu0 (!%p1021_p9), %v1267_v3 }
 0x122   : > { %v1046_v6 = vpop.f32.mrb[0].mxu0  ;;  %v1052_v7 = vpop.f32.mrb[0].mxu1 }
 0x123   : > { %v1047_v9 = vpop.f32.mrb[1].mxu0  ;;  %v1053_v11 = vpop.f32.mrb[1].mxu1 }
 0x124   : > { %v1048_v12 = vadd.f32 %v1047_v9, %v1046_v6  ;;  %v1054_v13 = vadd.f32 %v1053_v11, %v1052_v7  ;;  %v1049_v14 = vpop.f32.mrb[2].mxu0  ;;  %v1055_v15 = vpop.f32.mrb[2].mxu1  ;;  %v1114_v6 = vpack.c.bf16 (!%p1021_p9), %v821_v5, %v820_v4  ;;  %v822_v7 = vld [vmem:[%s1543_s7 + $0x20] sm:$0xff] (!%p1021_p9)  ;;  %v825_v11 = vld [vmem:[%s1543_s7 + $0x38] sm:$0xff] (!%p1021_p9) }
 0x125   : > { %v1050_v16 = vpop.f32.mrb[3].mxu0  ;;  %v1056_v17 = vpop.f32.mrb[3].mxu1 }
 0x126   : > { %v698_v18 = vadd.f32 %v1048_v12, %v999_v8  ;;  %v706_v19 = vadd.f32 %v1054_v13, %v999_v8  ;;  %v1051_v20 = vadd.f32 %v1050_v16, %v1049_v14  ;;  %v1057_v21 = vadd.f32 %v1056_v17, %v1055_v15  ;;  %1115 = vmatpush3.bf16.msra.mxu0 (!%p1021_p9), %v1114_v6  ;;  %v826_v13 = vld [vmem:[%s1543_s7 + $0x40] sm:$0xff] (!%p1021_p9)  ;;  %v827_v14 = vld [vmem:[%s1543_s7 + $0x48] sm:$0xff] (!%p1021_p9)  ;;  %v828_v16 = vld [vmem:[%s1543_s7 + $0x50] sm:$0xff] (!%p1021_p9) }
 0x127   : > { %1116 = vmatprep.subr.bf16.mxu0 (!%p1021_p9), %v1267_v3  ;;  %v1120_v12 = vpack.c.bf16 (!%p1021_p9), %v825_v11, %v824_v10  ;;  %v1123_v15 = vpack.c.bf16 (!%p1021_p9), %v827_v14, %v826_v13  ;;  %v829_v17 = vld [vmem:[%s1543_s7 + $0x58] sm:$0xff] (!%p1021_p9) }
 0x128   : > { %v712_v22 = vmax.f32 %v698_v18, 0.0  ;;  %v714_v23 = vmax.f32 %v706_v19, 0.0  ;;  %v701_v24 = vadd.f32 %v1051_v20, %v999_v8  ;;  %v709_v25 = vadd.f32 %v1057_v21, %v999_v8  ;;  %v823_v8 = vld [vmem:[%s1543_s7 + $0x28] sm:$0xff] (!%p1021_p9)  ;;  %v830_v19 = vld [vmem:[%s1543_s7 + $0x60] sm:$0xff] (!%p1021_p9) }
 0x129   : > { %v1117_v9 = vpack.c.bf16 (!%p1021_p9), %v823_v8, %v822_v7  ;;  %v1126_v18 = vpack.c.bf16 (!%p1021_p9), %v829_v17, %v828_v16  ;;  %v831_v20 = vld [vmem:[%s1543_s7 + $0x68] sm:$0xff] (!%p1021_p9) }
 0x12a   : > { %v724_v26 = vsel %vm721_vm8, %v712_v22, 0.0  ;;  %v726_v27 = vsel %vm721_vm8, %v714_v23, 0.0  ;;  %v713_v28 = vmax.f32 %v701_v24, 0.0  ;;  %v715_v29 = vmax.f32 %v709_v25, 0.0  ;;  %v832_v22 = vld [vmem:[%s1543_s7 + $0x70] sm:$0xff] (!%p1021_p9)  ;;  %v833_v23 = vld [vmem:[%s1543_s7 + $0x78] sm:$0xff] (!%p1021_p9) }
 0x12b   : > { %v729_v30 = vrot.slane %v724_v26, 4  ;;  %v741_v31 = vrot.slane %v726_v27, 4  ;;  %1118 = vmatpush3.bf16.msra.mxu0 (!%p1021_p9), %v1117_v9  ;;  %v1129_v21 = vpack.c.bf16 (!%p1021_p9), %v831_v20, %v830_v19  ;;  %v1132_v24 = vpack.c.bf16 (!%p1021_p9), %v833_v23, %v832_v22 }
 0x12c   : > { %v725_v32 = vsel %vm721_vm8, %v713_v28, 0.0  ;;  %v727_v33 = vsel %vm721_vm8, %v715_v29, 0.0  ;;  %1119 = vmatprep.subr.bf16.mxu0 (!%p1021_p9), %v1267_v3  ;;  %v1269_v25 = vmov (!%p1021_p9), 0.0  }
 0x12d   : > { %v730_v34 = vadd.f32 %v729_v30, %v724_v26  ;;  %v742_v35 = vadd.f32 %v741_v31, %v726_v27  ;;  %v735_v36 = vrot.slane %v725_v32, 4  ;;  %v747_v37 = vrot.slane %v727_v33, 4  ;;  %1107 = vmatprep.mubr.msk.f32.mxu0 (!%p1021_p9), %vm1268_vm12, %v1269_v25  ;;  %v776_v27 = vpop.permute.xlu0 (!%p1021_p9), %775 }
 0x12f   : > { %v731_v38 = vrot.slane %v730_v34, 2  ;;  %v743_v39 = vrot.slane %v742_v35, 2  ;;  %v736_v40 = vadd.f32 %v735_v36, %v725_v32  ;;  %v748_v41 = vadd.f32 %v747_v37, %v727_v33  ;;  %1121 = vmatpush3.bf16.msra.mxu0 (!%p1021_p9), %v1120_v12 }
 0x130   : > { %1122 = vmatprep.subr.bf16.mxu0 (!%p1021_p9), %v1267_v3 }
 0x131   : > { %v732_v42 = vadd.f32 %v731_v38, %v730_v34  ;;  %v744_v43 = vadd.f32 %v743_v39, %v742_v35  ;;  %v737_v44 = vrot.slane %v736_v40, 2  ;;  %v749_v45 = vrot.slane %v748_v41, 2 }
 0x133   : > { %v733_v46 = vrot.slane %v732_v42, 1  ;;  %v738_v47 = vadd.f32 %v737_v44, %v736_v40  ;;  %v750_v48 = vadd.f32 %v749_v45, %v748_v41  ;;  %v745_v49 = vrot.slane %v744_v43, 1  ;;  %1124 = vmatpush3.bf16.msra.mxu0 (!%p1021_p9), %v1123_v15 }
 0x134   : > { %1125 = vmatprep.subr.bf16.mxu0 (!%p1021_p9), %v1267_v3 }
 0x135   : > { %v739_v50 = vrot.slane %v738_v47, 1  ;;  %v751_v51 = vrot.slane %v750_v48, 1  ;;  %v734_v52 = vadd.f32 %v733_v46, %v732_v42  ;;  %v746_v54 = vadd.f32 %v745_v49, %v744_v43  ;;  %v1022_v49 = vld [vmem:[%s1541_s5] ss:$0 sm:$0xff] (!%p1021_p9) }
 0x137   : > { %v740_v53 = vadd.f32 %v739_v50, %v738_v47  ;;  %v752_v57 = vadd.f32 %v751_v51, %v750_v48  ;;  %1127 = vmatpush3.bf16.msra.mxu0 (!%p1021_p9), %v1126_v18  ;;  %v1023_v51 = vld [vmem:[%s1542_s6] ss:$0 sm:$0xff] (!%p1021_p9) }
 0x138   : > { %769 = sbr.rel (%p1021_p9) target bundleno = 596 (0x254), region = 143  ;;  %1128 = vmatprep.subr.bf16.mxu0 (!%p1021_p9), %v1267_v3 }
 0x139   : > { %v758_v55 = vsel %vm757_vm9, %v740_v53, %v734_v52 }
 0x13a   : > { %v760_v58 = vsel %vm759_vm10, %v746_v54, %v758_v55  ;;  %v1024_v54 = vld [vmem:[%s1544_s8] ss:$0 sm:$0xff] (!%p1021_p9) }
 0x13b   : > { %v762_v59 = vsel %vm761_vm11, %v752_v57, %v760_v58  ;;  %1130 = vmatpush3.bf16.msra.mxu0 (!%p1021_p9), %v1129_v21 }
 0x13c   : > { %v764_v60 = vadd.f32 %v762_v59, %v728_v56  ;;  %1131 = vmatprep.subr.bf16.mxu0 (!%p1021_p9), %v1267_v3 }
 0x13e   : > { %765 = vst [vmem:[#allocation2] sm:$0xf] %v764_v60 }
 0x13f   : > { %1133 = vmatpush3.bf16.msra.mxu0 %v1132_v24 }
 0x145   : > { %v772_v26 = vld [vmem:[#allocation2] sm:$0xf] }
 0x146   : > { %v778_v28 = vmul.f32 %v776_v27, %v772_v26 }
 0x148   : > { %v780_v29 = vsel %vm779_vm13, %v778_v28, 0.0 }
 0x149   : > { %v781_v30 = vrot.slane %v780_v29, 4 }
 0x14b   : > { %v782_v31 = vadd.f32 %v781_v30, %v780_v29 }
 0x14d   : > { %v783_v32 = vrot.slane %v782_v31, 2 }
 0x14f   : > { %v784_v33 = vadd.f32 %v783_v32, %v782_v31 }
 0x151   : > { %v785_v34 = vrot.slane %v784_v33, 1 }
 0x153   : > { %v786_v35 = vadd.f32 %v785_v34, %v784_v33 }
 0x155   : > { %v788_v36 = vmul.f32 0.25, %v786_v35 }
 0x157   : > { %v789_v37 = vsub.f32 %v778_v28, %v788_v36 }
 0x159   : > { %v790_v38 = vmul.f32 %v789_v37, %v789_v37 }
 0x15b   : > { %v791_v39 = vsel %vm779_vm13, %v790_v38, 0.0 }
 0x15c   : > { %v792_v40 = vrot.slane %v791_v39, 4 }
 0x15e   : > { %v793_v41 = vadd.f32 %v792_v40, %v791_v39 }
 0x160   : > { %v794_v42 = vrot.slane %v793_v41, 2 }
 0x162   : > { %v795_v43 = vadd.f32 %v794_v42, %v793_v41 }
 0x164   : > { %v796_v44 = vrot.slane %v795_v43, 1 }
 0x166   : > { %v797_v45 = vadd.f32 %v796_v44, %v795_v43 }
 0x168   : > { %v798_v46 = vmul.f32 0.25, %v797_v45 }
 0x16a   : > { %v799_v47 = vadd.f32 1e-05, %v798_v46 }
 0x16c   : > { %1207 = vrsqrt.f32 %v799_v47 }
 0x176   : > { %v1208_v48 = vpop.eup %1207 }
 0x177   : > { %v801_v50 = vmul.f32 %v1208_v48, %v789_v37 }
 0x179   : > { %v809_v52 = vmul.f32 %v1022_v49, %v801_v50 }
 0x17b   : > { %v817_v53 = vadd.f32 %v1023_v51, %v809_v52 }
 0x17d   : > { %1108 = vmatmul.mubr.f32.vlgmr.msra.gmra.mrb[0].mxu0 %v817_v53 }
 0x250   : > { %v907_v55 = vpop.f32.mrb[0].mxu0 }
 0x251   : > { %v908_v56 = vadd.f32 %v1024_v54, %v907_v55  ;;  %v1109_v57 = vpop.f32.mrb[1].mxu0 }
 0x253   : > { %912 = vst.msk [vmem:[#allocation5] sm:$0xf] %vm911_vm14, %v908_v56 }
 0x254 PF: > { %p1154_p10 = scmp.eq.s32.totalorder %s1337_s12, 1  ;;  %s1270_s29 = smov [#allocation5]  }
 0x255   : > { %s920_s14 = sshll.u32 %s1270_s29, 4  ;;  %s921_s14 = int_to_ptr.vmem [resolvable:$true] %s920_s14 }
 0x256   : > { %s1209_s21 = scalar_lea.vmem %s921_s14, 64  ;;  %p1216_p0 = scmp.lt.s32.totalorder %s921_s14, %s921_s14 }
 0x257   : > { %p1210_p11 = scmp.ne.s32.totalorder %s921_s14, %s1209_s21  ;;  %p1217_p1 = scmp.lt.s32.totalorder %s1209_s21, %s1209_s21 }
 0x259   : > { %p1211_p12 = pnand %p1210_p11, %p1154_p10  ;;  %p1218_p2 = por %p1217_p1, %p1216_p0 }
 0x25b   : > { %p1212_p13 = pneg %p1211_p12 }
 0x25d   : > { %p1219_p3 = pnand %p1218_p2, %p1212_p13 }
 0x25f   : > { %1222 = shalt.err (!%p1219_p3)
}
 0x260   : > { %s1223_s20 = scalar_lea.hbm %s1545_s9, 64 }
 0x261   : > { %p1224_p4 = scmp.ne.s32.totalorder %s1545_s9, %s1223_s20  ;;  %p1229_p7 = scmp.lt.u32.totalorder %s1223_s20, %s1545_s9 }
 0x263   : > { %p1225_p5 = pnand %p1224_p4, %p1154_p10 }
 0x265   : > { %p1226_p6 = pneg %p1225_p5 }
 0x267   : > { %p1231_p8 = pnand %p1229_p7, %p1226_p6 }
 0x269   : > { %1234 = shalt.err (!%p1231_p8)
}
 0x26a   : > { %1151 = dma.vmem_to_hbm [thread:$0]  (%p1154_p10), %s921_s14, 64, %s1545_s9, [#allocation6]  }
 0x26b   : > { %1248 = dma.done.wait (%p1154_p10), [#allocation6], 64  }
 0x26c   : > { %1250 = vsyncadd (%p1154_p10), [#allocation6], 4294967232 }
 0x26d PF: > { %p17_p9 = scmp.ge.s32.totalorder %s1340_s13, 4   ;;  %s1547_s30 = smov %s1257_s10 }
 0x26e   : > { %s1548_s10 = smov %s1349_s16  ;;  %s1549_s11 = smov %s1340_s13 }
 0x26f   :  { %19 = sbr.rel (!%p17_p9) target bundleno = 2 (0x2), region = 183 }
 0x276   :  { %933 = vsyncpa [#allocation6], 1 }
 0x277   :  { %935 = vsyncpa [#allocation6 + $0x1], 1 }

</bundles_post_ra>
